<compile_context>
chip_gen: v7x
topology: tpu7x:2x2x1
jax: 0.10.0
libtpu: 0.0.40
codegen_flags: <defaults>
</compile_context>

<pallas_src>
import math
import functools

import jax
import jax.numpy as jnp
from jax.experimental import pallas as pl
from jax.experimental.pallas import tpu as pltpu


# --------------------------------------------------------------------------
# Buffer construction — mirrors PositionalEncoding.__init__ (sin even, cos odd)
# --------------------------------------------------------------------------
def make_positional_encoding(d_model: int, max_len: int = 100) -> jnp.ndarray:
    """Returns pe of shape (max_len, 1, d_model), same as the PyTorch buffer."""
    position = jnp.arange(0, max_len, dtype=jnp.float32)[:, None]            # (L, 1)
    div_term = jnp.exp(
        jnp.arange(0, d_model, 2, dtype=jnp.float32) * (-math.log(10000.0) / d_model)
    )                                                                         # (D/2,)
    angles = position * div_term                                              # (L, D/2)
    pe = jnp.stack([jnp.sin(angles), jnp.cos(angles)], axis=-1).reshape(max_len, d_model)
    return pe[:, None, :]                                                     # (L, 1, D)


# --------------------------------------------------------------------------
# Pallas kernels — blocks are (block_seq, block_batch, D); pe is (block_seq, 1, D)
# and broadcasts over the batch (sublane) axis with no materialized temporary.
# --------------------------------------------------------------------------
def _pe_add_kernel(x_ref, pe_ref, o_ref):
    y = x_ref[...].astype(jnp.float32) + pe_ref[...]          # f32 compute
    o_ref[...] = y.astype(o_ref.dtype)


def _pe_add_dropout_bits_kernel(x_ref, pe_ref, bits_ref, o_ref, *, threshold, scale):
    # Portable training path: random bits precomputed in the wrapper.
    y = x_ref[...].astype(jnp.float32) + pe_ref[...]
    keep = bits_ref[...] >= jnp.uint32(threshold)              # P(keep) = 1 - p
    o_ref[...] = jnp.where(keep, y * jnp.float32(scale),
                           jnp.float32(0.0)).astype(o_ref.dtype)


def _pe_add_dropout_prng_kernel(seed_ref, x_ref, pe_ref, o_ref, *, threshold, scale):
    # TPU training path: mask generated on-chip (no extra HBM read).
    step = pl.program_id(0) * pl.num_programs(1) + pl.program_id(1)
    pltpu.prng_seed(seed_ref[0] + step)
    y = x_ref[...].astype(jnp.float32) + pe_ref[...]
    bits = pltpu.prng_random_bits(y.shape)
    if bits.dtype != jnp.uint32:
        bits = pltpu.bitcast(bits, jnp.uint32)
    keep = bits >= jnp.uint32(threshold)                       # P(keep) = 1 - p
    o_ref[...] = jnp.where(keep, y * jnp.float32(scale),
                           jnp.float32(0.0)).astype(o_ref.dtype)


# --------------------------------------------------------------------------
# Tile sizing
# --------------------------------------------------------------------------
_VMEM_LIMIT_BYTES = 48 * 1024 * 1024      # safe on v5e/v6e (128 MiB) and v7x (64 MiB)
_OPERAND_VMEM_BUDGET = 24 * 1024 * 1024   # double-buffered x/out(/bits) tiles
_X_TILE_TARGET_BYTES = 4 * 1024 * 1024    # ~4 MiB x tile amortizes per-step overhead


def _sublane_multiple(itemsize: int) -> int:
    # dtype-aware sublane packing: f32 -> 8, bf16 -> 16, int8/fp8 -> 32
    return {4: 8, 2: 16, 1: 32}.get(itemsize, 8)


def _pick_blocks(S, B, D, x_itemsize, extra_bytes_per_elem):
    """Choose (block_seq, block_batch).  Lane dim D is always taken in full."""
    bytes_per_elem = 2 * x_itemsize + extra_bytes_per_elem     # x + out (+ bits)
    sub = _sublane_multiple(x_itemsize)

    max_tile_elems = max(1, _OPERAND_VMEM_BUDGET // (2 * bytes_per_elem))
    max_tile_elems = min(max_tile_elems, max(1, _X_TILE_TARGET_BYTES // x_itemsize))

    # Batch (sublane) tile: prefer full B; else a multiple of the packing factor.
    block_b = B
    if block_b * D > max_tile_elems and B > sub:
        block_b = max(sub, ((max_tile_elems // D) // sub) * sub)
        block_b = min(block_b, B)

    # Sequence tile is an outer (untiled) dim: no (8,128) constraint.
    block_seq = max(1, min(S, max_tile_elems // max(block_b * D, 1)))

    # Guarantee >=2 grid steps when possible so v7x can use both TensorCores.
    if block_seq >= S and block_b >= B and S >= 2:
        block_seq = -(-S // 2)                                  # cdiv(S, 2)

    return int(block_seq), int(block_b)


# --------------------------------------------------------------------------
# Wrapper
# --------------------------------------------------------------------------
def positional_encoding_forward(x, pe, *, p=0.1, deterministic=True, seed=0,
                                block_seq=None, block_batch=None):
    """x: (S, B, D). pe: (max_len, 1, D). Returns (S, B, D) = dropout(x + pe[:S])."""
    S, B, D = x.shape
    pe_s = pe[:S].astype(jnp.float32)                          # (S, 1, D), tiny, f32

    use_onchip_prng = (jax.default_backend() == "tpu")
    training = (not deterministic) and p > 0.0
    extra_bytes = 4 if (training and not use_onchip_prng) else 0

    bs, bb = _pick_blocks(S, B, D, x.dtype.itemsize, extra_bytes)
    if block_seq is not None:
        bs = int(min(block_seq, S))
    if block_batch is not None:
        bb = int(min(block_batch, B))

    grid = (pl.cdiv(S, bs), pl.cdiv(B, bb))
    x_spec = pl.BlockSpec((bs, bb, D), lambda i, j, *_: (i, j, 0))
    pe_spec = pl.BlockSpec((bs, 1, D), lambda i, j, *_: (i, 0, 0))
    out_spec = pl.BlockSpec((bs, bb, D), lambda i, j, *_: (i, j, 0))
    out_shape = jax.ShapeDtypeStruct((S, B, D), x.dtype)

    compiler_params = pltpu.CompilerParams(
        dimension_semantics=("parallel", "parallel"),
        vmem_limit_bytes=_VMEM_LIMIT_BYTES)

    n_elems = S * B * D
    io_bytes = (2 * x.dtype.itemsize + extra_bytes) * n_elems

    if not training:
        return pl.pallas_call(
            _pe_add_kernel,
            out_shape=out_shape,
            grid_spec=pltpu.PrefetchScalarGridSpec(
                num_scalar_prefetch=0, grid=grid,
                in_specs=[x_spec, pe_spec], out_specs=out_spec),
            compiler_params=compiler_params,
            cost_estimate=pl.CostEstimate(
                flops=n_elems, transcendentals=0, bytes_accessed=io_bytes),
        )(x, pe_s)

    if p >= 1.0:
        return jnp.zeros_like(x)

    threshold = min(max(int(round(p * float(1 << 32))), 0), (1 << 32) - 1)
    scale = 1.0 / (1.0 - p)
    cost = pl.CostEstimate(flops=3 * n_elems, transcendentals=0,
                           bytes_accessed=io_bytes)

    if use_onchip_prng:
        # TODO(synk): on-chip PRNG has no interpreter lowering, so the dropout
        # mask differs between TPU (on-chip bits) and non-TPU (host bits) runs.
        seed_arr = jnp.array([seed], dtype=jnp.int32)
        return pl.pallas_call(
            functools.partial(_pe_add_dropout_prng_kernel,
                              threshold=threshold, scale=scale),
            out_shape=out_shape,
            grid_spec=pltpu.PrefetchScalarGridSpec(
                num_scalar_prefetch=1,                         # seed -> SMEM
                grid=grid,
                in_specs=[x_spec, pe_spec], out_specs=out_spec),
            compiler_params=compiler_params,
            cost_estimate=cost,
        )(seed_arr, x, pe_s)

    bits = jax.random.bits(jax.random.PRNGKey(seed), (S, B, D), dtype=jnp.uint32)
    bits_spec = pl.BlockSpec((bs, bb, D), lambda i, j, *_: (i, j, 0))
    return pl.pallas_call(
        functools.partial(_pe_add_dropout_bits_kernel,
                          threshold=threshold, scale=scale),
        out_shape=out_shape,
        grid_spec=pltpu.PrefetchScalarGridSpec(
            num_scalar_prefetch=0, grid=grid,
            in_specs=[x_spec, pe_spec, bits_spec], out_specs=out_spec),
        compiler_params=compiler_params,
        cost_estimate=cost,
    )(x, pe_s, bits)


# --------------------------------------------------------------------------
# Demo / correctness check
# --------------------------------------------------------------------------
if __name__ == "__main__":
    d_model = 32
    max_len = 100
    seq, batch = 8, 4

    key = jax.random.PRNGKey(0)
    x = jax.random.normal(key, (seq, batch, d_model), dtype=jnp.float32)
    pe = make_positional_encoding(d_model, max_len)
    ref = x + pe[:seq].astype(x.dtype)

    # Eval mode (dropout is identity) — exact match vs reference.
    out = positional_encoding_forward(x, pe, p=0.1, deterministic=True)
    out = jax.block_until_ready(out)
    assert out.shape == (seq, batch, d_model)
    assert jnp.allclose(out, ref, atol=1e-6, rtol=1e-6)

    # bf16 input: compute stays in f32, cast only at the store.
    x_bf16 = x.astype(jnp.bfloat16)
    out_bf16 = positional_encoding_forward(x_bf16, pe, p=0.1, deterministic=True)
    out_bf16 = jax.block_until_ready(out_bf16)
    ref_bf16 = (x_bf16.astype(jnp.float32) + pe[:seq, 0, :][:, None, :]).astype(jnp.bfloat16)
    assert jnp.allclose(out_bf16.astype(jnp.float32),
                        ref_bf16.astype(jnp.float32), atol=1e-2, rtol=1e-2)

    # Training mode (inverted dropout) — surviving elements equal ref/(1-p).
    p = 0.1
    out_tr = positional_encoding_forward(x, pe, p=p, deterministic=False, seed=1234)
    out_tr = jax.block_until_ready(out_tr)
    assert out_tr.shape == (seq, batch, d_model)
    kept = out_tr != 0
    assert jnp.allclose(jnp.where(kept, out_tr, 0.0),
                        jnp.where(kept, ref / (1.0 - p), 0.0),
                        atol=1e-5, rtol=1e-5)

    print("KERNEL_OK")
</pallas_src>

<mosaic_0001>
module attributes {stable_mosaic.version = 11 : i64} {
  func.func @_pe_add_kernel(%arg0: i32, %arg1: i32, %arg2: memref<4x4x32xf32, #tpu.memory_space<vmem>>, %arg3: memref<4x1x32xf32, #tpu.memory_space<vmem>>, %arg4: memref<4x4x32xf32, #tpu.memory_space<vmem>>) attributes {dimension_semantics = [#tpu.dimension_semantics<parallel>, #tpu.dimension_semantics<parallel>], iteration_bounds = array<i64: 2, 1>, scalar_prefetch = 0 : i64, scratch_operands = 0 : i64, tpu.core_type = #tpu.core_type<tc>, window_params = [{transform_indices = @transform_0, window_bounds = array<i64: 4, 4, 32>}, {transform_indices = @transform_1, window_bounds = array<i64: 4, 1, 32>}, {transform_indices = @transform_2, window_bounds = array<i64: 4, 4, 32>}]} {
    %c0 = arith.constant 0 : index
    %c0_0 = arith.constant 0 : index
    %c0_1 = arith.constant 0 : index
    %0 = vector.load %arg2[%c0, %c0_0, %c0_1] : memref<4x4x32xf32, #tpu.memory_space<vmem>>, vector<4x4x32xf32>
    %c0_2 = arith.constant 0 : index
    %c0_3 = arith.constant 0 : index
    %c0_4 = arith.constant 0 : index
    %1 = vector.load %arg3[%c0_2, %c0_3, %c0_4] : memref<4x1x32xf32, #tpu.memory_space<vmem>>, vector<4x1x32xf32>
    %2 = vector.broadcast %1 : vector<4x1x32xf32> to vector<4x4x32xf32>
    %3 = arith.addf %0, %2 : vector<4x4x32xf32>
    %c0_5 = arith.constant 0 : index
    %c0_6 = arith.constant 0 : index
    %c0_7 = arith.constant 0 : index
    %4 = vector.load %arg4[%c0_5, %c0_6, %c0_7] : memref<4x4x32xf32, #tpu.memory_space<vmem>>, vector<4x4x32xf32>
    tpu.vector_store %arg4[%c0_5, %c0_6, %c0_7], %3 {strides = array<i32>} : memref<4x4x32xf32, #tpu.memory_space<vmem>>, vector<4x4x32xf32>,
    return
  }
  func.func @transform_0(%arg0: i32, %arg1: i32) -> (i32, i32, i32) {
    %c0_i32 = arith.constant 0 : i32
    %c0_i32_0 = arith.constant 0 : i32
    return %arg0, %arg1, %c0_i32 : i32, i32, i32
  }
  func.func @transform_1(%arg0: i32, %arg1: i32) -> (i32, i32, i32) {
    %c0_i32 = arith.constant 0 : i32
    %c0_i32_0 = arith.constant 0 : i32
    %c0_i32_1 = arith.constant 0 : i32
    return %arg0, %c0_i32, %c0_i32_0 : i32, i32, i32
  }
  func.func @transform_2(%arg0: i32, %arg1: i32) -> (i32, i32, i32) {
    %c0_i32 = arith.constant 0 : i32
    %c0_i32_0 = arith.constant 0 : i32
    return %arg0, %arg1, %c0_i32 : i32, i32, i32
  }
}

</mosaic_0001>

<bundles_post_ra>
// kernel: tpu_custom_call.1
= control target key start
LH: loop header
LB: loop body
LE: loop exit
PB: predicated region body
PF: predicated region fallthrough
CT: control target
= control target key end

     0   :  { %7 = vsyncpa [#allocation3], 0  ;;  %s886_s0 = inlined_call_operand.hbm [shape: f32[8,4,32], index: 0, kind: input, shape index: {}]   ;;  %s887_s1 = inlined_call_operand.hbm [shape: f32[8,1,32], index: 1, kind: input, shape index: {}]   ;;  %s888_s2 = inlined_call_operand.hbm [shape: f32[8,4,32], index: 2, kind: output, shape index: {}]  }
   0x1   :  { %9 = vsyncpa [#allocation3 + $0x1], 0 }
   0x2   :  { %10 = vsyncpa [#allocation6], 0 }
   0x3   :  { %12 = vsyncpa [#allocation6 + $0x1], 0 }
   0x4   :  { %13 = vsyncpa [#allocation4], 0 }
   0x5   :  { %15 = vsyncpa [#allocation4 + $0x1], 0  ;;  %s657_s9 = smov 0   ;;  %s659_s10 = smov 0  }
   0x6   :  { %s661_s11 = smov 0   ;;  %s663_s12 = smov 0  }
   0x7   :  { %s665_s13 = smov 0   ;;  %s667_s14 = smov 0  }
   0x8 LB: > { %s386_s15 = sadd.s32 4294967295, %s631_s14   ;;  %s387_s16 = sadd.s32 4294967294, %s631_s14   ;;  %s631_s14 = sphi %s667_s14, %s21_s14   ;;  %s627_s13 = sphi %s665_s13, %s906_s13   ;;  %s623_s12 = sphi %s663_s12, %s905_s12   ;;  %s619_s11 = sphi %s661_s11, %s904_s11   ;;  %s615_s10 = sphi %s659_s10, %s903_s10   ;;  %s611_s9 = sphi %s657_s9, %s902_s9  }
   0x9   : > { %s33_s17 = sadd.s32 1, %s627_s13  ;;  %s42_s18 = sadd.s32 1, %s619_s11 }
   0xa   : > { %p35_p0 = scmp.ge.s32.totalorder %s33_s17, 2  ;;  %p49_p1 = scmp.ne.s32.totalorder %s619_s11, %s615_s10 }
   0xb   : > { %p50_p2 = scmp.eq.s32.totalorder %s631_s14, 0  ;;  %p55_p3 = scmp.ne.s32.totalorder %s615_s10, %s611_s9 }
   0xc   : > { %s908_s17 = smov (%p35_p0, %s33_s17), 0  ;;  %p56_p5 = scmp.eq.s32.totalorder %s386_s15, 0 }
   0xd   : > { %p698_p4 = por %p50_p2, %p49_p1  ;;  %s37_s20 = ssub.s32 %s627_s13, %s908_s17 }
   0xe   : > { %p107_p6 = scmp.eq.s32.totalorder %s386_s15, 1  ;;  %p40_p7 = scmp.eq.s32.totalorder %s37_s20, 0 }
   0xf   : > { %p704_p8 = por %p56_p5, %p55_p3  ;;  %p113_p10 = scmp.eq.s32.totalorder %s387_s16, 1 }
  0x10   : > { %p708_p9 = por %p107_p6, %p49_p1  ;;  %p429_p13 = scmp.lt.s32.totalorder %s631_s14, 2 }
  0x11   : > { %s892_s21 = scalar_select %p704_p8, 1, 0 }
  0x12   : > { %s893_s22 = scalar_select %p708_p9, 1, 0 }
  0x13   : > { %s713_s23 = scalar_select %p40_p7, %s619_s11, %s42_s18  }
  0x14   : > { %p715_p11 = por %p113_p10, %p55_p3  ;;  %s722_s25 = sand.u32 1, %s619_s11  }
  0x15   : > { %s390_s26 = sshll.u32 %s722_s25, 4  ;;  %s409_s27 = sshll.u32 %s627_s13, 8 }
  0x16   : > { %s894_s24 = scalar_select %p715_p11, 1, 0 }
  0x17   : > { %s729_s30 = scalar_lea.hbm %s886_s0, %s409_s27  ;;  %s137_s3 = scalar_lea.vmem [#allocation2], %s390_s26 }
  0x18   : > { %s145_s4 = sshll.u32 %s137_s3, 4  ;;  %p735_p0 = pnand %p429_p13, %p698_p4  ;;  %s731_s4 = int_to_ptr.vmem [resolvable:$true] %s145_s4 }
  0x19   : > { %s134_s6 = scalar_lea.sflag [#allocation3], %s722_s25  ;;  %s485_s7 = scalar_lea.hbm %s729_s30, 256 }
  0x1a   : > { %p486_p2 = scmp.ne.s32.totalorder %s729_s30, %s485_s7  ;;  %p487_p3 = pneg %p735_p0 }
  0x1b   : > { %s490_s16 = scalar_lea.hbm %s886_s0, 512  ;;  %p491_p4 = scmp.lt.u32.totalorder %s729_s30, %s886_s0 }
  0x1c   : > { %p488_p5 = pnand %p487_p3, %p486_p2  ;;  %p492_p7 = scmp.lt.u32.totalorder %s490_s16, %s485_s7 }
  0x1d   : > { %p494_p13 = scmp.lt.u32.totalorder %s485_s7, %s729_s30 }
  0x1e   : > { %p489_p6 = pneg %p488_p5  ;;  %p493_p10 = por %p492_p7, %p491_p4 }
  0x20   : > { %p495_p12 = por %p494_p13, %p493_p10 }
  0x22   : > { %p496_p1 = pnand %p495_p12, %p489_p6 }
  0x24   : > { %499 = shalt.err (!%p496_p1)
}
  0x25   : > { %s500_s20 = scalar_lea.vmem %s731_s4, 256  ;;  %s633_s26 = smov [#allocation2]  }
  0x26   : > { %p501_p2 = scmp.ne.s32.totalorder %s731_s4, %s500_s20  ;;  %s505_s27 = sshll.u32 %s633_s26, 4  ;;  %s506_s27 = int_to_ptr.vmem [resolvable:$false] %s505_s27 }
  0x27   : > { %s507_s28 = scalar_lea.vmem %s506_s27, 512  ;;  %p508_p9 = scmp.lt.s32.totalorder %s731_s4, %s506_s27 }
  0x28   : > { %p503_p5 = pnand %p501_p2, %p487_p3  ;;  %p509_p4 = scmp.lt.s32.totalorder %s507_s28, %s500_s20 }
  0x2a   : > { %p504_p11 = pneg %p503_p5  ;;  %p510_p7 = por %p509_p4, %p508_p9 }
  0x2c   : > { %p511_p10 = pnand %p510_p7, %p504_p11 }
  0x2e   : > { %514 = shalt.err (!%p511_p10)
}
  0x2f   : > { %s634_s29 = smov 64   ;;  %s635_s3 = smov 4  }
  0x30   : > { %421 = dma.hbm_to_vmem [thread:$0]  (!%p735_p0), %s729_s30, 256, %s731_s4, %s134_s6, %s634_s29, %s634_s29, %s635_s3  }
  0x31   : > { %p174_p12 = scmp.lt.s32.totalorder %s631_s14, 3  ;;  %s393_s7 = sshll.u32 %s722_s25, 2 }
  0x32   : > { %s410_s8 = sshll.u32 %s627_s13, 6  ;;  %p896_p9 = scmp.ge.s32.totalorder %s631_s14, 1 }
  0x33   : > { %s780_s19 = scalar_lea.hbm %s887_s1, %s410_s8  ;;  %s159_s20 = scalar_lea.vmem [#allocation5], %s393_s7 }
  0x34   : > { %p773_p11 = pnand %p896_p9, %p174_p12  ;;  %s166_s26 = sshll.u32 %s159_s20, 4  ;;  %s782_s26 = int_to_ptr.vmem [resolvable:$true] %s166_s26 }
  0x35   : > { %s156_s30 = scalar_lea.sflag [#allocation6], %s722_s25  ;;  %s515_s4 = scalar_lea.hbm %s780_s19, 64 }
  0x36   : > { %p516_p1 = scmp.ne.s32.totalorder %s780_s19, %s515_s4  ;;  %s520_s28 = scalar_lea.hbm %s887_s1, 128 }
  0x37   : > { %p521_p2 = scmp.lt.u32.totalorder %s780_s19, %s887_s1  ;;  %p522_p5 = scmp.lt.u32.totalorder %s520_s28, %s515_s4 }
  0x38   : > { %p518_p6 = pnand %p516_p1, %p487_p3  ;;  %p524_p7 = scmp.lt.u32.totalorder %s515_s4, %s780_s19 }
  0x39   : > { %p523_p4 = por %p522_p5, %p521_p2 }
  0x3a   : > { %p519_p13 = pneg %p518_p6 }
  0x3b   : > { %p525_p10 = por %p524_p7, %p523_p4 }
  0x3d   : > { %p526_p12 = pnand %p525_p10, %p519_p13 }
  0x3f   : > { %529 = shalt.err (!%p526_p12)
}
  0x40   : > { %s530_s7 = scalar_lea.vmem %s782_s26, 64  ;;  %s636_s8 = smov [#allocation5]  }
  0x41   : > { %p531_p9 = scmp.ne.s32.totalorder %s782_s26, %s530_s7  ;;  %s535_s16 = sshll.u32 %s636_s8, 4  ;;  %s536_s16 = int_to_ptr.vmem [resolvable:$false] %s535_s16 }
  0x42   : > { %s537_s18 = scalar_lea.vmem %s536_s16, 128  ;;  %p538_p8 = scmp.lt.s32.totalorder %s782_s26, %s536_s16 }
  0x43   : > { %p533_p1 = pnand %p531_p9, %p487_p3  ;;  %p539_p2 = scmp.lt.s32.totalorder %s537_s18, %s530_s7 }
  0x45   : > { %p534_p6 = pneg %p533_p1  ;;  %p540_p5 = por %p539_p2, %p538_p8 }
  0x47   : > { %p541_p4 = pnand %p540_p5, %p534_p6 }
  0x49   : > { %544 = shalt.err (!%p541_p4)
}
  0x4a   : > { %s637_s20 = smov 16   ;;  %s638_s4 = smov 1  }
  0x4b   : > { %424 = dma.hbm_to_vmem [thread:$0]  (!%p735_p0), %s780_s19, 64, %s782_s26, %s156_s30, %s637_s20, %s637_s20, %s638_s4  }
  0x4c   : > { %178 = sbr.rel (%p773_p11) target bundleno = 115 (0x73), region = 28  ;;  %s813_s6 = sand.u32 (!%p773_p11), 1, %s615_s10  }
  0x4d   : > { %s397_s27 = sshll.u32 (!%p773_p11), %s813_s6, 4  ;;  %s181_s28 = scalar_lea.sflag (!%p773_p11), [#allocation3], %s813_s6 }
  0x4e   : > { %s184_s29 = scalar_lea.vmem (!%p773_p11), [#allocation2], %s397_s27  ;;  %p898_p8 = scmp.ne.s32.totalorder (!%p773_p11), %s892_s21, 0 }
  0x53   : > { %598 = dma.done.wait (%p898_p8), %s181_s28, 256  }
  0x54   : > { %600 = vsyncadd (%p898_p8), %s181_s28, 4294967040  ;;  %s398_s25 = sshll.u32 %s813_s6, 2  ;;  %s190_s5 = scalar_lea.sflag [#allocation6], %s813_s6 }
  0x55   : > { %s193_s15 = scalar_lea.vmem [#allocation5], %s398_s25 }
  0x56   : > { %602 = dma.done.wait (%p898_p8), %s190_s5, 64  }
  0x57   : > { %604 = vsyncadd (%p898_p8), %s190_s5, 4294967232  ;;  %vm258_vm0 = vcmask 257024   ;;  %s218_s19 = scalar_lea.vmem [#allocation7], %s397_s27  ;;  %s411_s30 = sshll.u32 %s623_s12, 8  ;;  %v222_v0 = vld [vmem:[%s184_s29] sm:$0xf] }
  0x58   : > { %s278_s26 = sshll.u32 %s218_s19, 4  ;;  %v400_v1 = vld [vmem:[%s193_s15] ss:$0 sm:$0xff]  ;;  %v223_v2 = vld [vmem:[%s184_s29 + $0x4] sm:$0xf]  ;;  %s833_s12 = scalar_lea.hbm %s888_s2, %s411_s30  ;;  %s828_s26 = int_to_ptr.vmem [resolvable:$true] %s278_s26 }
  0x59   : > { %v254_v3 = vadd.f32 %v400_v1, %v222_v0  ;;  %v401_v4 = vld [vmem:[%s193_s15 + $0x1] ss:$0 sm:$0xff]  ;;  %v224_v5 = vld [vmem:[%s184_s29 + $0x8] sm:$0xf]  ;;  %v402_v6 = vld [vmem:[%s193_s15 + $0x2] ss:$0 sm:$0xff] }
  0x5a   : > { %v255_v7 = vadd.f32 %v401_v4, %v223_v2  ;;  %v256_v8 = vadd.f32 %v402_v6, %v224_v5  ;;  %v225_v9 = vld [vmem:[%s184_s29 + $0xc] sm:$0xf]  ;;  %v403_v10 = vld [vmem:[%s193_s15 + $0x3] ss:$0 sm:$0xff]  ;;  %s264_s7 = scalar_lea.sflag [#allocation4], %s813_s6  ;;  %s545_s8 = scalar_lea.vmem %s828_s26, 256 }
  0x5b   : > { %259 = vst.msk [vmem:[%s218_s19] sm:$0xf] %vm258_vm0, %v254_v3  ;;  %v257_v11 = vadd.f32 %v403_v10, %v225_v9  ;;  %p546_p0 = scmp.ne.s32.totalorder %s828_s26, %s545_s8  ;;  %p899_p3 = scmp.ne.s32.totalorder %s893_s22, 0 }
  0x5c   : > { %260 = vst.msk [vmem:[%s218_s19 + $0x4] sm:$0xf] %vm258_vm0, %v255_v7  ;;  %261 = vst.msk [vmem:[%s218_s19 + $0x8] sm:$0xf] %vm258_vm0, %v256_v8  ;;  %s639_s16 = smov [#allocation7]  }
  0x5d   : > { %262 = vst.msk [vmem:[%s218_s19 + $0xc] sm:$0xf] %vm258_vm0, %v257_v11  ;;  %p547_p11 = pnand %p546_p0, %p899_p3  ;;  %s549_s18 = sshll.u32 %s639_s16, 4  ;;  %s550_s18 = int_to_ptr.vmem [resolvable:$false] %s549_s18 }
  0x5e   : > { %s551_s20 = scalar_lea.vmem %s550_s18, 512  ;;  %p552_p7 = scmp.lt.s32.totalorder %s828_s26, %s550_s18 }
  0x5f   : > { %p548_p13 = pneg %p547_p11  ;;  %p553_p10 = scmp.lt.s32.totalorder %s551_s20, %s545_s8 }
  0x61   : > { %p554_p12 = por %p553_p10, %p552_p7 }
  0x63   : > { %p555_p9 = pnand %p554_p12, %p548_p13 }
  0x65   : > { %558 = shalt.err (!%p555_p9)
}
  0x66   : > { %s559_s4 = scalar_lea.hbm %s833_s12, 256  ;;  %s563_s29 = scalar_lea.hbm %s888_s2, 512 }
  0x67   : > { %p560_p1 = scmp.ne.s32.totalorder %s833_s12, %s559_s4  ;;  %p564_p5 = scmp.lt.u32.totalorder %s833_s12, %s888_s2 }
  0x68   : > { %p565_p4 = scmp.lt.u32.totalorder %s563_s29, %s559_s4  ;;  %p567_p0 = scmp.lt.u32.totalorder %s559_s4, %s833_s12 }
  0x69   : > { %p561_p6 = pnand %p560_p1, %p899_p3 }
  0x6a   : > { %p566_p8 = por %p565_p4, %p564_p5 }
  0x6b   : > { %p562_p2 = pneg %p561_p6 }
  0x6c   : > { %p568_p11 = por %p567_p0, %p566_p8 }
  0x6e   : > { %p569_p13 = pnand %p568_p11, %p562_p2 }
  0x70   : > { %572 = shalt.err (!%p569_p13)
}
  0x71   : > { %s640_s15 = smov 64   ;;  %s641_s19 = smov 4  }
  0x72   : > { %416 = dma.vmem_to_hbm [thread:$0]  (%p899_p3), %s828_s26, 256, %s833_s12, %s264_s7, %s640_s15, %s640_s15, %s641_s19  }
  0x73 PF: > { %s293_s30 = sand.u32 1, %s611_s9   ;;  %p900_p7 = scmp.ne.s32.totalorder %s894_s24, 0 }
  0x74   : > { %p901_p10 = scmp.ge.s32.totalorder %s631_s14, 2  ;;  %s294_s21 = scalar_lea.sflag [#allocation4], %s293_s30 }
  0x76   : > { %p426_p12 = pnand %p901_p10, %p900_p7 }
  0x78   : > { %606 = dma.done.wait (!%p426_p12), %s294_s21, 256  }
  0x79   : > { %608 = vsyncadd (!%p426_p12), %s294_s21, 4294967040  ;;  %s21_s14 = sadd.s32 1, %s631_s14   ;;  %s902_s9 = smov %s615_s10 }
  0x7a   : > { %p18_p9 = scmp.ge.s32.totalorder %s21_s14, 4   ;;  %s903_s10 = smov %s619_s11 }
  0x7b   : > { %s904_s11 = smov %s713_s23  ;;  %s905_s12 = smov %s627_s13 }
  0x7c   : > { %s906_s13 = smov %s908_s17  ;;  %20 = sbr.rel (!%p18_p9) target bundleno = 8 (0x8), region = 86 }
  0x83   :  { %299 = vsyncpa [#allocation3], 1 }
  0x84   :  { %301 = vsyncpa [#allocation3 + $0x1], 1 }
  0x85   :  { %302 = vsyncpa [#allocation6], 1 }
  0x86   :  { %304 = vsyncpa [#allocation6 + $0x1], 1 }
  0x87   :  { %305 = vsyncpa [#allocation4], 1 }
  0x88   :  { %307 = vsyncpa [#allocation4 + $0x1], 1 }

</bundles_post_ra>
